<compile_context>
chip_gen: v6e
topology: v6e:2x2x1
jax: 0.10.0
libtpu: 0.0.40
codegen_flags: <defaults>
</compile_context>

<pallas_src>
import jax
import jax.numpy as jnp
from jax.experimental import pallas as pl
from jax.experimental.pallas import tpu as pltpu


# ------------------------------- Kernel ------------------------------------ #
def _embed_kernel(x_ref, w_ref, o_ref):
    # x_ref: (tm, g*d_inp), w_ref: (g*d_inp, g*d_model) -> o_ref: (tm, g*d_model)
    o_ref[...] = jnp.dot(
        x_ref[...], w_ref[...], preferred_element_type=jnp.float32
    ).astype(o_ref.dtype)


def _round_up(n, m):
    return ((n + m - 1) // m) * m


# ------------------------------ Wrapper ------------------------------------ #
def time_feature_embedding(x, weight, *, compute_dtype=None, out_dtype=None,
                           max_tile=4096):
    """y = x @ weight.T for nn.Linear(d_inp, d_model, bias=False).

    x: (B, L, d_inp); weight: torch nn.Linear layout (d_model, d_inp).
    compute_dtype: operand dtype fed to the MXU (bf16 halves the HBM read
      stream on every generation); accumulation is always f32.
    out_dtype: dtype written back to HBM (bf16 halves the dominant write
      stream if downstream accepts it).
    """
    B, L, d_inp = x.shape
    d_model = weight.shape[0]
    if compute_dtype is None:
        compute_dtype = x.dtype
    if out_dtype is None:
        out_dtype = x.dtype
    in_bytes = jnp.dtype(compute_dtype).itemsize
    out_bytes = jnp.dtype(out_dtype).itemsize

    # --- Lane-dense output packing: group g rows so the output block is a
    #     full 128-lane slab (pure layout plumbing; the padded MXU FLOPs are
    #     free at K <= 6). --------------------------------------------------
    if d_model < 128 and 128 % d_model == 0:
        g = 128 // d_model
    else:
        g = 1

    N = B * L
    M = pl.cdiv(N, g)                      # grouped rows

    # --- Row-tile selection: go big, few grid steps (per-step overhead
    #     ~0.35us), but keep the double-buffered x+y footprint well inside
    #     the scoped-VMEM default shared by v5e/v6e/v7x. --------------------
    row_align = 8 if (in_bytes == 4 and out_bytes == 4) else 16
    bytes_per_row = (g * d_inp) * in_bytes + (g * d_model) * out_bytes
    vmem_budget = 12 * 1024 * 1024         # headroom under the 32 MiB default
    cap = max(row_align,
              (vmem_budget // (2 * bytes_per_row)) // row_align * row_align)
    max_tile = min(max_tile, cap)

    if _round_up(M, row_align) <= max_tile:
        tm = _round_up(M, row_align)       # whole problem in one grid step
    else:
        tm = max_tile
    Mp = _round_up(M, tm)
    grid = (Mp // tm,)

    # --- Trace-time layout plumbing (tiny) ---------------------------------
    Np = Mp * g
    x2d = x.reshape(N, d_inp)
    if Np != N:
        x2d = jnp.pad(x2d, ((0, Np - N), (0, 0)))
    xg = x2d.reshape(Mp, g * d_inp).astype(compute_dtype)

    w_t = weight.T.astype(compute_dtype)                     # (d_inp, d_model)
    w_blk = jnp.kron(jnp.eye(g, dtype=compute_dtype), w_t)   # (g*d_inp, g*d_model)

    cost = pl.CostEstimate(
        flops=2 * Mp * (g * d_inp) * (g * d_model),
        transcendentals=0,
        bytes_accessed=(Mp * g * d_inp + (g * d_inp) * (g * d_model)) * in_bytes
                       + Mp * g * d_model * out_bytes,
    )

    yg = pl.pallas_call(
        _embed_kernel,
        out_shape=jax.ShapeDtypeStruct((Mp, g * d_model), out_dtype),
        grid=grid,
        in_specs=[
            pl.BlockSpec((tm, g * d_inp), lambda i: (i, 0)),         # rows stream
            pl.BlockSpec((g * d_inp, g * d_model), lambda i: (0, 0)),  # weight resident
        ],
        out_specs=pl.BlockSpec((tm, g * d_model), lambda i: (i, 0)),
        compiler_params=pltpu.CompilerParams(
            dimension_semantics=("parallel",),
        ),
        cost_estimate=cost,
    )(xg, w_blk)

    # Same HBM bytes: just a view / slice back to (B, L, d_model).
    y2d = yg.reshape(Np, d_model)[:N]
    return y2d.reshape(B, L, d_model)


# ------------------------------ Reference ----------------------------------- #
def reference_forward(x, weight):
    return jnp.einsum("bli,oi->blo", x, weight)


# --------------------------------- Main -------------------------------------- #
if __name__ == "__main__":
    import math

    freq_map = {"h": 4, "t": 5, "s": 6, "m": 1, "a": 1, "w": 2, "d": 3, "b": 3}
    d_inp = freq_map["h"]          # 4
    d_model = 32

    key = jax.random.PRNGKey(0)
    kx, kw, kx2 = jax.random.split(key, 3)

    # torch nn.Linear default init: U(-1/sqrt(fan_in), 1/sqrt(fan_in))
    bound = 1.0 / math.sqrt(d_inp)
    weight = jax.random.uniform(kw, (d_model, d_inp), jnp.float32, -bound, bound)

    # Case 1: nominal small shape.
    B, L = 2, 8
    x = jax.random.normal(kx, (B, L, d_inp), jnp.float32)
    y = jax.block_until_ready(time_feature_embedding(x, weight))
    ref = reference_forward(x, weight)
    assert y.shape == (B, L, d_model)
    assert jnp.allclose(y, ref, atol=1e-2, rtol=1e-2)

    # Case 2: row count not divisible by the group size (exercises padding/slice).
    B2, L2 = 3, 7
    x2 = jax.random.normal(kx2, (B2, L2, d_inp), jnp.float32)
    y2 = jax.block_until_ready(time_feature_embedding(x2, weight))
    ref2 = reference_forward(x2, weight)
    assert y2.shape == (B2, L2, d_model)
    assert jnp.allclose(y2, ref2, atol=1e-2, rtol=1e-2)

    print("KERNEL_OK")
</pallas_src>

<mosaic_0001>
module attributes {stable_mosaic.version = 11 : i64} {
  func.func @_embed_kernel(%arg0: i32, %arg1: memref<8x16xf32, #tpu.memory_space<vmem>>, %arg2: memref<16x128xf32, #tpu.memory_space<vmem>>, %arg3: memref<8x128xf32, #tpu.memory_space<vmem>>) attributes {dimension_semantics = [#tpu.dimension_semantics<parallel>], iteration_bounds = array<i64: 1>, scalar_prefetch = 0 : i64, scratch_operands = 0 : i64, tpu.core_type = #tpu.core_type<tc>, window_params = [{transform_indices = @transform_0, window_bounds = array<i64: 8, 16>}, {pipeline_mode = #tpu.pipeline_mode<synchronous>, transform_indices = @transform_1, window_bounds = array<i64: 16, 128>}, {transform_indices = @transform_2, window_bounds = array<i64: 8, 128>}]} {
    %c0 = arith.constant 0 : index
    %c0_0 = arith.constant 0 : index
    %0 = vector.load %arg1[%c0, %c0_0] : memref<8x16xf32, #tpu.memory_space<vmem>>, vector<8x16xf32>
    %c0_1 = arith.constant 0 : index
    %c0_2 = arith.constant 0 : index
    %1 = vector.load %arg2[%c0_1, %c0_2] : memref<16x128xf32, #tpu.memory_space<vmem>>, vector<16x128xf32>
    %cst = arith.constant dense<0.000000e+00> : vector<8x128xf32>
    %2 = tpu.matmul %0, %1, %cst {dimension_numbers = #tpu.dot_dimension_numbers<[1], [0], [0], [1], [0, 0, 1, 1], [], []>} : vector<8x16xf32>, vector<16x128xf32>, vector<8x128xf32> -> vector<8x128xf32>
    %c0_3 = arith.constant 0 : index
    %c0_4 = arith.constant 0 : index
    %3 = vector.load %arg3[%c0_3, %c0_4] : memref<8x128xf32, #tpu.memory_space<vmem>>, vector<8x128xf32>
    tpu.vector_store %arg3[%c0_3, %c0_4], %2 {strides = array<i32>} : memref<8x128xf32, #tpu.memory_space<vmem>>, vector<8x128xf32>,
    return
  }
  func.func @transform_0(%arg0: i32) -> (i32, i32) {
    %c0_i32 = arith.constant 0 : i32
    %c0_i32_0 = arith.constant 0 : i32
    return %arg0, %c0_i32 : i32, i32
  }
  func.func @transform_1(%arg0: i32) -> (i32, i32) {
    %c0_i32 = arith.constant 0 : i32
    %c0_i32_0 = arith.constant 0 : i32
    %c0_i32_1 = arith.constant 0 : i32
    return %c0_i32, %c0_i32_0 : i32, i32
  }
  func.func @transform_2(%arg0: i32) -> (i32, i32) {
    %c0_i32 = arith.constant 0 : i32
    %c0_i32_0 = arith.constant 0 : i32
    return %arg0, %c0_i32 : i32, i32
  }
}

</mosaic_0001>

<bundles_post_ra>
// kernel: tpu_custom_call.1
= control target key start
LH: loop header
LB: loop body
LE: loop exit
PB: predicated region body
PF: predicated region fallthrough
CT: control target
= control target key end

     0   :  { %7 = vsyncpa [#allocation3], 0  ;;  %s247_s0 = inlined_call_operand.hbm [shape: f32[8,16], index: 0, kind: input, shape index: {}]   ;;  %s248_s1 = inlined_call_operand.hbm [shape: f32[16,128], index: 1, kind: input, shape index: {}]   ;;  %s249_s2 = inlined_call_operand.hbm [shape: f32[8,128], index: 2, kind: output, shape index: {}]  }
   0x1   :  { %8 = vsyncpa [#allocation6], 0 }
   0x2   :  { %9 = vsyncpa [#allocation4], 0  ;;  %s216_s9 = smov [#allocation2]   ;;  %s217_s11 = smov [#allocation5]  }
   0x3   :  { %s16_s10 = sshll.u32 %s216_s9, 4  ;;  %s25_s12 = sshll.u32 %s217_s11, 4  ;;  %s17_s10 = int_to_ptr.vmem [resolvable:$true] %s16_s10  ;;  %s26_s12 = int_to_ptr.vmem [resolvable:$true] %s25_s12 }
   0x4   :  { %s158_s13 = scalar_lea.vmem %s17_s10, 128  ;;  %p163_p1 = scmp.lt.s32.totalorder %s17_s10, %s17_s10 }
   0x5   :  { %p159_p0 = scmp.ne.s32.totalorder %s17_s10, %s158_s13  ;;  %p164_p2 = scmp.lt.s32.totalorder %s158_s13, %s158_s13 }
   0x7   :  { %p165_p3 = por %p164_p2, %p163_p1 }
   0x9   :  { %p166_p4 = pnand %p165_p3, %p159_p0 }
   0xb   :  { %169 = shalt.err (!%p166_p4)
}
   0xc   :  { %19 = dma.hbm_to_vmem [thread:$0]  %s247_s0, 128, %s17_s10, [#allocation3]  }
   0xd   :  { %s178_s16 = scalar_lea.vmem %s26_s12, 256  ;;  %p183_p6 = scmp.lt.s32.totalorder %s26_s12, %s26_s12 }
   0xe   :  { %p179_p5 = scmp.ne.s32.totalorder %s26_s12, %s178_s16  ;;  %p184_p7 = scmp.lt.s32.totalorder %s178_s16, %s178_s16 }
  0x10   :  { %p185_p8 = por %p184_p7, %p183_p6 }
  0x12   :  { %p186_p9 = pnand %p185_p8, %p179_p5 }
  0x14   :  { %189 = shalt.err (!%p186_p9)
}
  0x15   :  { %s218_s17 = smov 128   ;;  %s219_s18 = smov 8  }
  0x16   :  { %31 = dma.hbm_to_vmem [thread:$0]  %s248_s1, 256, %s26_s12, [#allocation6], %s218_s17, %s218_s17, %s219_s18  }
  0x17   :  { %210 = dma.done.wait [#allocation3], 128  }
  0x18   :  { %211 = vsyncadd [#allocation3], 4294967168 }
  0x19   :  { %212 = dma.done.wait [#allocation6], 256  }
  0x1a   :  { %213 = vsyncadd [#allocation6], 4294967040  ;;  %v220_v0 = vmov 0.0   ;;  %vm221_vm0 = vmmov 0   ;;  %v40_v1 = vld [vmem:[#allocation5 + $0x8] sm:$0xff]  ;;  %v39_v2 = vld [vmem:[#allocation5] sm:$0xff] }
  0x1b   :  { %136 = vmatprep.subr.mxu0 %v220_v0  ;;  %140 = vmatprep.mubr.msk.f32.mxu0 %vm221_vm0, %v220_v0  ;;  %v38_v3 = vld [vmem:[#allocation2] sm:$0xff]  ;;  %vm41_vm1 = vcmask 130048   ;;  %s222_s0 = smov [#allocation7]  }
  0x1c   :  { %137 = vmatpush3.msra.mxu0 %v40_v1  ;;  %s122_s21 = sshll.u32 %s222_s0, 4  ;;  %s123_s21 = int_to_ptr.vmem [resolvable:$true] %s122_s21 }
  0x1d   :  { %138 = vmatprep.subr.mxu0 %v220_v0  ;;  %s190_s1 = scalar_lea.vmem %s123_s21, 128  ;;  %p195_p11 = scmp.lt.s32.totalorder %s123_s21, %s123_s21 }
  0x1e   :  { %139 = vmatpush3.msra.mxu0 %v39_v2  ;;  %p191_p10 = scmp.ne.s32.totalorder %s123_s21, %s190_s1  ;;  %p196_p12 = scmp.lt.s32.totalorder %s190_s1, %s190_s1 }
  0x1f   :  { %141 = vmatmul.mubr.msk.f32.vlgmr.msra.gmra.mxu0 %vm41_vm1, %v38_v3 }
  0x20   :  { %p197_p13 = por %p196_p12, %p195_p11 }
  0x22   :  { %p198_p0 = pnand %p197_p13, %p191_p10 }
  0xdf   :  { %v111_v4 = vpop.f32.mrf.mxu0 }
  0xe0   :  { %115 = vst [vmem:[#allocation7] sm:$0xff] %v111_v4 }
  0xe1   :  { %v142_v5 = vpop.f32.mrf.mxu0 }
  0xe2   :  { %201 = shalt.err (!%p198_p0)
}
  0xe3   :  { %125 = dma.vmem_to_hbm [thread:$0]  %s123_s21, 128, %s249_s2, [#allocation4]  }
  0xe4   :  { %214 = dma.done.wait [#allocation4], 128  }
  0xe5   :  { %215 = vsyncadd [#allocation4], 4294967168 }
  0xe6   :  { %129 = vsyncpa [#allocation3], 1 }
  0xe7   :  { %130 = vsyncpa [#allocation6], 1 }
  0xe8   :  { %131 = vsyncpa [#allocation4], 1 }

</bundles_post_ra>
